<compile_context>
chip_gen: v7x
topology: tpu7x:2x2x1
jax: 0.10.0
libtpu: 0.0.40
codegen_flags: <defaults>
</compile_context>

<pallas_src>
import functools

import jax
import jax.numpy as jnp
import numpy as np
from jax.experimental import pallas as pl
from jax.experimental.pallas import tpu as pltpu

H = W = 4
HW = H * W            # 16 spatial positions
C_IN = 64 + 8         # 72 channels after concat(xf, tiled xg)
B_TILE = 32           # images per grid step -> 512 activation rows (fills MXU M)

# Tap order k = ky*3 + kx ; row offset of that tap in the (b*HW + oi*W + oj) layout.
_DELTAS = tuple((ky - 1) * W + (kx - 1) for ky in range(3) for kx in range(3))
_CENTER = 4           # ky=1, kx=1 -> d=0, all-ones pad mask


# ---------------------------------------------------------------------------
# Kernel
# ---------------------------------------------------------------------------
def _conv3x3_fused(h, wcat_ref, b_ref, masks_ref, roll_sign, relu):
    """h: (rows, Cin); wcat_ref: (Cin, 9*Cout) tap-concatenated weights;
    b_ref: (1, Cout) f32; masks_ref: (9, rows, 1) f32 per-row pad masks.

    One wide matmul per layer; per-tap spatial shifts are sublane rolls of the
    matmul OUTPUT (roll commutes with the per-row channel matmul), and the 0/1
    pad mask is applied post-matmul at Cout width (< Cin)."""
    rows = h.shape[0]
    cout = wcat_ref.shape[1] // 9
    p = jnp.dot(h, wcat_ref[...], preferred_element_type=jnp.float32)   # (rows, 9*Cout)
    acc = p[:, _CENTER * cout:(_CENTER + 1) * cout]                     # center tap seed
    for k, d in enumerate(_DELTAS):
        if d == 0:
            continue
        tap = pltpu.roll(p[:, k * cout:(k + 1) * cout],
                         (roll_sign * d) % rows, 0)                     # out[r] = (h[r+d] @ W_k)
        acc = acc + masks_ref[k] * tap                                  # post-matmul pad mask
    acc = acc + b_ref[...]                                              # bias fused here
    return jnp.maximum(acc, 0.0) if relu else acc


def _disc_kernel(roll_sign, cdtype, x_ref, masks_ref,
                 wc1, bc1, wc2, bc2, wc3, bc3,
                 a_ref, rsum_ref, c_ref, y_ref):
    h = x_ref[...]                                                      # (B_TILE*16, 72), cdtype
    h = _conv3x3_fused(h, wc1, bc1, masks_ref, roll_sign, True).astype(cdtype)   # (rows, 32)
    h = _conv3x3_fused(h, wc2, bc2, masks_ref, roll_sign, True).astype(cdtype)   # (rows, 16)
    h3 = _conv3x3_fused(h, wc3, bc3, masks_ref, roll_sign, True)                 # (rows, 8) f32

    # Folded conv4 -> flatten -> fc1 -> fc2 tail: y[b] = sum(h3_b * A) + c
    prod = h3 * a_ref[...]                                              # (rows, 8)      VPU
    psum = jnp.dot(rsum_ref[...], prod,
                   preferred_element_type=jnp.float32)                 # (B_TILE, 8) per-image sums
    y_ref[...] = (jnp.sum(psum, axis=1, keepdims=True)
                  + c_ref[0, 0]).astype(y_ref.dtype)                   # (B_TILE, 1)


# ---------------------------------------------------------------------------
# Glue: roll-direction probe, masks, tail folding, pallas_call wrapper.
# ---------------------------------------------------------------------------
_ROLL_SIGN = None


def _detect_roll_sign():
    """One-time tiny probe so the kernel's shifts realize out[r] = in[r + d]
    regardless of the rotate convention of pltpu.roll on this build."""
    global _ROLL_SIGN
    if _ROLL_SIGN is None:
        def probe(x_ref, o_ref):
            o_ref[...] = pltpu.roll(x_ref[...], 1, 0)
        x = jnp.tile(jnp.arange(8, dtype=jnp.float32)[:, None], (1, 128))
        out = pl.pallas_call(
            probe, out_shape=jax.ShapeDtypeStruct((8, 128), jnp.float32))(x)
        # numpy convention (out[i] = in[i-shift]) -> out[1]==0 -> use shift = -d.
        _ROLL_SIGN = -1 if float(out[1, 0]) == 0.0 else 1
    return _ROLL_SIGN


def _default_use_bf16():
    """bf16 activations only on generations with bf16 VPU/MXU paths (v6e/v7x)."""
    try:
        kind = jax.devices()[0].device_kind.lower()
    except Exception:
        return False
    return ("v6" in kind) or ("v7" in kind)


def _make_tap_masks(b_tile):
    m = np.zeros((9, HW), np.float32)
    for ky in range(3):
        for kx in range(3):
            k = ky * 3 + kx
            for oi in range(H):
                for oj in range(W):
                    if 0 <= oi + ky - 1 < H and 0 <= oj + kx - 1 < W:
                        m[k, oi * W + oj] = 1.0
    return jnp.asarray(np.tile(m, (1, b_tile)).reshape(9, b_tile * HW, 1))


def _make_shift_matrices():
    g = np.zeros((9, HW, HW), np.float32)
    for ky in range(3):
        for kx in range(3):
            k = ky * 3 + kx
            for oi in range(H):
                for oj in range(W):
                    si, sj = oi + ky - 1, oj + kx - 1
                    if 0 <= si < H and 0 <= sj < W:
                        g[k, oi * W + oj, si * W + sj] = 1.0
    return g


def _full_spec(shape):
    n = len(shape)
    return pl.BlockSpec(shape, lambda i, n=n: (0,) * n)


def appearance_compatibility_discriminator(xf, xg, params, b_tile=B_TILE, use_bf16=None):
    """Returns (y, x) like the PyTorch module: y=(B,1), x=concat NCHW (B,72,4,4)."""
    # The "cross-image roll leakage is always masked" argument only holds for
    # H=W=4 with a 3x3/pad=1 window — assert so a shape change fails loudly.
    assert H == 4 and W == 4, "roll-based tap shifts rely on the 4x4 / 3x3 masking argument"

    B = xf.shape[0]
    if use_bf16 is None:
        use_bf16 = _default_use_bf16()
    cdtype = jnp.bfloat16 if use_bf16 else jnp.float32

    xg2 = jnp.tile(xg, (1, 1, H, W))                          # torch .repeat([1,1,H,W])
    x_nchw = jnp.concatenate([xf, xg2], axis=1)               # (B, 72, 4, 4)

    # --- batch blocking: row = b*16 + oi*4 + oj; no forced 2-block padding ---
    num_blocks = pl.cdiv(B, b_tile)
    Bp = num_blocks * b_tile
    x_hwc = x_nchw.transpose(0, 2, 3, 1).reshape(B, HW, C_IN)
    if Bp > B:
        x_hwc = jnp.pad(x_hwc, ((0, Bp - B), (0, 0), (0, 0)))
    x_rows = x_hwc.reshape(Bp * HW, C_IN).astype(cdtype)      # (Bp*16, 72)

    # --- conv1..3 weights: torch (Cout,Cin,3,3) -> tap-concatenated (Cin, 9*Cout)
    #     with W_cat[:, k*Cout:(k+1)*Cout] == W_k ---
    conv_args = []
    for (w, b) in params["convs"][:3]:
        cout, cin = w.shape[0], w.shape[1]
        w9 = w.transpose(2, 3, 1, 0).reshape(9, cin, cout)    # (k, Cin, Cout)
        wcat = w9.transpose(1, 0, 2).reshape(cin, 9 * cout)   # (Cin, 9*Cout)
        conv_args += [wcat.astype(cdtype), b.reshape(1, cout).astype(jnp.float32)]

    # --- fold conv4 + Linear(64,16) + Linear(16,1) into A (HW, 8) + scalar c ---
    w4, b4 = params["convs"][3]                               # (4,8,3,3), (4,)
    (w1, b1), (w2, b2) = params["lin"]                        # (16,64),(16,)  (1,16),(1,)
    w12 = (w2 @ w1).reshape(4, HW)                            # [c_out, hw_out] torch flatten c*16+hw
    g = jnp.asarray(_make_shift_matrices())                   # (9, HW_out, HW_in)
    w4r = w4.reshape(4, 8, 9)                                 # [c_out, c_in, k]
    A = jnp.einsum("co,kos,cik->si", w12, g, w4r)             # (HW, 8): y = sum(h3 * A) + c
    c_total = (w2 @ b1 + b2)[0] + jnp.sum(jnp.sum(w12, axis=1) * b4)
    a_tiled = jnp.tile(A, (b_tile, 1)).astype(jnp.float32)    # (b_tile*16, 8)
    rsum = jnp.asarray(np.repeat(np.eye(b_tile, dtype=np.float32), HW, axis=1))
    masks = _make_tap_masks(b_tile)

    args = [x_rows, masks] + conv_args + [a_tiled, rsum,
                                          c_total.reshape(1, 1).astype(jnp.float32)]
    in_specs = [pl.BlockSpec((b_tile * HW, C_IN), lambda i: (i, 0))]
    in_specs += [_full_spec(a.shape) for a in args[1:-1]]
    in_specs += [pl.BlockSpec(memory_space=pltpu.MemorySpace.SMEM)]   # scalar tail constant

    kernel = functools.partial(_disc_kernel, _detect_roll_sign(), cdtype)
    out = pl.pallas_call(
        kernel,
        out_shape=jax.ShapeDtypeStruct((Bp, 1), jnp.float32),
        grid_spec=pltpu.PrefetchScalarGridSpec(
            num_scalar_prefetch=0,
            grid=(num_blocks,),
            in_specs=in_specs,
            out_specs=pl.BlockSpec((b_tile, 1), lambda i: (i, 0)),
        ),
        compiler_params=pltpu.CompilerParams(dimension_semantics=("parallel",)),
    )(*args)

    return out[:B], x_nchw


# ---------------------------------------------------------------------------
# Deterministic synthetic parameters (shapes from the module's __init__).
# ---------------------------------------------------------------------------
def init_params(key):
    conv_dims = [(C_IN, 32), (32, 16), (16, 8), (8, 4)]
    lin_dims = [(64, 16), (16, 1)]
    params = {"convs": [], "lin": []}
    keys = jax.random.split(key, 2 * (len(conv_dims) + len(lin_dims)))
    i = 0
    for cin, cout in conv_dims:
        w = jax.random.normal(keys[i], (cout, cin, 3, 3), jnp.float32) * 0.05
        b = jax.random.normal(keys[i + 1], (cout,), jnp.float32) * 0.05
        params["convs"].append((w, b))
        i += 2
    for fin, fout in lin_dims:
        w = jax.random.normal(keys[i], (fout, fin), jnp.float32) * 0.05
        b = jax.random.normal(keys[i + 1], (fout,), jnp.float32) * 0.05
        params["lin"].append((w, b))
        i += 2
    return params


# Pure-JAX reference (mirrors the PyTorch forward, NCHW) for validation.
def reference(xf, xg, params):
    xg2 = jnp.tile(xg, (1, 1, H, W))
    x = jnp.concatenate([xf, xg2], axis=1)
    h = x
    for idx, (w, b) in enumerate(params["convs"]):
        h = jax.lax.conv_general_dilated(
            h, w, window_strides=(1, 1), padding=[(1, 1), (1, 1)],
            dimension_numbers=("NCHW", "OIHW", "NCHW")) + b[None, :, None, None]
        if idx < 3:
            h = jnp.maximum(h, 0.0)
    z = h.reshape(h.shape[0], -1)                              # channel-major flatten
    for (w, b) in params["lin"]:
        z = z @ w.T + b[None, :]
    return z, x


if __name__ == "__main__":
    key = jax.random.PRNGKey(0)
    kxf, kxg, kp = jax.random.split(key, 3)
    B = 2
    xf = jax.random.normal(kxf, (B, 64, H, W), jnp.float32)
    xg = jax.random.normal(kxg, (B, 8, 1, 1), jnp.float32)
    params = init_params(kp)

    use_bf16 = _default_use_bf16()
    y, xcat = appearance_compatibility_discriminator(xf, xg, params, use_bf16=use_bf16)
    jax.block_until_ready((y, xcat))

    y_ref, x_ref_arr = reference(xf, xg, params)
    tol = 2e-2 if use_bf16 else 1e-3           # looser only when bf16 activations are used
    assert y.shape == (B, 1) and xcat.shape == (B, C_IN, H, W)
    assert jnp.allclose(xcat, x_ref_arr)
    assert jnp.allclose(y, y_ref, rtol=tol, atol=tol), (y, y_ref)
    print("KERNEL_OK")
</pallas_src>

<mosaic_0001>
module attributes {stable_mosaic.version = 11 : i64} {
  func.func @probe(%arg0: memref<8x128xf32, #tpu.memory_space<vmem>>, %arg1: memref<8x128xf32, #tpu.memory_space<vmem>>) attributes {dimension_semantics = [], scalar_prefetch = 0 : i64, scratch_operands = 0 : i64, tpu.core_type = #tpu.core_type<tc>} {
    %c0 = arith.constant 0 : index
    %c0_0 = arith.constant 0 : index
    %0 = vector.load %arg0[%c0, %c0_0] : memref<8x128xf32, #tpu.memory_space<vmem>>, vector<8x128xf32>
    %c1_i32 = arith.constant 1 : i32
    %1 = tpu.dynamic_rotate %0 by %c1_i32 dim 0 : vector<8x128xf32>, i32 -> vector<8x128xf32>
    %c0_1 = arith.constant 0 : index
    %c0_2 = arith.constant 0 : index
    %2 = vector.load %arg1[%c0_1, %c0_2] : memref<8x128xf32, #tpu.memory_space<vmem>>, vector<8x128xf32>
    tpu.vector_store %arg1[%c0_1, %c0_2], %1 {strides = array<i32>} : memref<8x128xf32, #tpu.memory_space<vmem>>, vector<8x128xf32>,
    return
  }
}

</mosaic_0001>

<bundles_post_ra>
// kernel: tpu_custom_call.1
= control target key start
LH: loop header
LB: loop body
LE: loop exit
PB: predicated region body
PF: predicated region fallthrough
CT: control target
= control target key end

     0   :  { %6 = vsyncpa [#allocation3], 0  ;;  %s125_s0 = inlined_call_operand.hbm [shape: f32[8,128], index: 0, kind: input, shape index: {}]   ;;  %s126_s1 = inlined_call_operand.hbm [shape: f32[8,128], index: 1, kind: output, shape index: {}]  }
   0x1   :  { %7 = vsyncpa [#allocation4], 0  ;;  %s89_s6 = smov [#allocation2]   ;;  %s41_s10 = scalar_lea.hbm %s125_s0, 128 }
   0x2   :  { %s14_s7 = sshll.u32 %s89_s6, 4  ;;  %p42_p0 = scmp.ne.s32.totalorder %s125_s0, %s41_s10  ;;  %s15_s7 = int_to_ptr.vmem [resolvable:$true] %s14_s7 }
   0x3   :  { %p45_p1 = scmp.lt.u32.totalorder %s41_s10, %s125_s0 }
   0x5   :  { %p47_p2 = pnand %p45_p1, %p42_p0 }
   0x7   :  { %50 = shalt.err (!%p47_p2)
}
   0x8   :  { %s51_s15 = scalar_lea.vmem %s15_s7, 128  ;;  %p56_p4 = scmp.lt.s32.totalorder %s15_s7, %s15_s7 }
   0x9   :  { %p52_p3 = scmp.ne.s32.totalorder %s15_s7, %s51_s15  ;;  %p57_p5 = scmp.lt.s32.totalorder %s51_s15, %s51_s15 }
   0xb   :  { %p58_p6 = por %p57_p5, %p56_p4 }
   0xd   :  { %p59_p7 = pnand %p58_p6, %p52_p3 }
   0xf   :  { %62 = shalt.err (!%p59_p7)
}
  0x10   :  { %17 = dma.hbm_to_vmem [thread:$0]  %s125_s0, 128, %s15_s7, [#allocation3]  }
  0x11   :  { %85 = dma.done.wait [#allocation3], 128  }
  0x12   :  { %86 = vsyncadd [#allocation3], 4294967168  ;;  %s90_s18 = smov [#allocation5]   ;;  %v21_v0 = vld [vmem:[#allocation2] sm:$0xff] }
  0x13   :  { %s30_s19 = sshll.u32 %s90_s18, 4  ;;  %v22_v1 = vrot.slane %v21_v0, 7  ;;  %s31_s19 = int_to_ptr.vmem [resolvable:$true] %s30_s19 }
  0x14   :  { %s63_s20 = scalar_lea.vmem %s31_s19, 128  ;;  %p68_p9 = scmp.lt.s32.totalorder %s31_s19, %s31_s19 }
  0x15   :  { %23 = vst [vmem:[#allocation5] sm:$0xff] %v22_v1  ;;  %p64_p8 = scmp.ne.s32.totalorder %s31_s19, %s63_s20  ;;  %p69_p10 = scmp.lt.s32.totalorder %s63_s20, %s63_s20 }
  0x17   :  { %p70_p11 = por %p69_p10, %p68_p9 }
  0x19   :  { %p71_p12 = pnand %p70_p11, %p64_p8 }
  0x1b   :  { %74 = shalt.err (!%p71_p12)
}
  0x1c   :  { %s75_s23 = scalar_lea.hbm %s126_s1, 128 }
  0x1d   :  { %p76_p13 = scmp.ne.s32.totalorder %s126_s1, %s75_s23  ;;  %p79_p0 = scmp.lt.u32.totalorder %s75_s23, %s126_s1 }
  0x1f   :  { %p81_p1 = pnand %p79_p0, %p76_p13 }
  0x21   :  { %84 = shalt.err (!%p81_p1)
}
  0x22   :  { %33 = dma.vmem_to_hbm [thread:$0]  %s31_s19, 128, %s126_s1, [#allocation4]  }
  0x23   :  { %87 = dma.done.wait [#allocation4], 128  }
  0x24   :  { %88 = vsyncadd [#allocation4], 4294967168 }
  0x25   :  { %37 = vsyncpa [#allocation3], 1 }
  0x26   :  { %38 = vsyncpa [#allocation4], 1 }

</bundles_post_ra>
